<compile_context>
chip_gen: v7x
topology: tpu7x:2x2x1
jax: 0.10.0
libtpu: 0.0.40
codegen_flags: <defaults>
</compile_context>

<pallas_src>
import jax
import jax.numpy as jnp
from jax.experimental import pallas as pl
from jax.experimental.pallas import tpu as pltpu


# ---------------------------------------------------------------------------
# Kernel
# ---------------------------------------------------------------------------
def _triplet_loss_kernel(margin_ref, seg_ref, a_ref, p_ref, n_ref, o_ref):
    """One batch tile.

    margin_ref : (1,)     f32 scalar in SMEM.
    seg_ref    : (L, G)   f32 segment-indicator matrix (constant per call).
    a/p/n_ref  : (TR, L)  input tiles (native dtype, upcast here).
    o_ref      : (TR, G)  per-sample losses (G samples packed per row).
    """
    a = a_ref[...].astype(jnp.float32)
    p = p_ref[...].astype(jnp.float32)
    n = n_ref[...].astype(jnp.float32)

    dp = a - p
    dn = a - n
    # Fused: (a-p)^2 - (a-n)^2, reduced once.
    d = dp * dp - dn * dn                                    # (TR, L) f32

    # Segmented lane reduction on the MXU (idle in this kernel); seg_ref has
    # a 1.0 in column g for the D lanes belonging to packed sample g.
    s = jnp.dot(d, seg_ref[...], preferred_element_type=jnp.float32)  # (TR, G)

    o_ref[...] = jnp.maximum(s + margin_ref[0], 0.0)


# ---------------------------------------------------------------------------
# Block-size / VMEM heuristics
# ---------------------------------------------------------------------------
def _tpu_vmem_capacity_bytes():
    try:
        info = pltpu.get_tpu_info()
        cap = getattr(info, "vmem_capacity_bytes", None)
        if cap:
            return int(cap)
    except Exception:
        pass
    return 64 << 20  # conservative: v7x per-TensorCore VMEM


def _choose_block_budget(itemsize):
    """Return (target_bytes_per_input_block, vmem_limit_bytes)."""
    vmem_cap = _tpu_vmem_capacity_bytes()
    vmem_limit = 48 << 20
    if vmem_cap <= 80 << 20:
        # v7x-class: 64 MiB/TC.  3 inputs x 2 buffers x block + ~3 blocks of
        # f32 upcast temporaries must stay well under vmem_limit, so shrink
        # the target for sub-32-bit inputs (f32 temps are 2x the block then).
        target = (4 << 20) if itemsize >= 4 else (3 << 20)
    else:
        # v5e / v6e: 128 MiB physical VMEM; 2 MiB blocks are near roofline.
        target = 2 << 20
    return target, vmem_limit


def _choose_tile_rows(total_rows, lane_width, itemsize, target_bytes):
    """Rows per block: ~target bytes/block (real dtype), multiple of 8,
    capped so the grid keeps >= ~4 steps whenever the batch allows it."""
    rows = max(8, int(target_bytes) // (lane_width * itemsize))
    rows = (rows // 8) * 8
    if total_rows >= 4 * 8:
        # Keep at least ~4 grid steps: preserves double-buffering overlap and
        # the 2-TensorCore split of the "parallel" axis on v7x.
        cap = ((pl.cdiv(total_rows, 4) + 7) // 8) * 8
        rows = min(rows, cap)
    if rows >= total_rows:
        return total_rows          # full extent is always a legal block dim
    return max(8, rows)


# ---------------------------------------------------------------------------
# Pallas call on a packed (R, L) layout
# ---------------------------------------------------------------------------
def _triplet_loss_pallas(anchor, positive, negative, margin, G):
    Bm, D = anchor.shape
    R = Bm // G               # rows after packing
    L = G * D                 # lane width after packing (== D when G == 1)
    itemsize = jnp.dtype(anchor.dtype).itemsize

    a2 = anchor.reshape(R, L)
    p2 = positive.reshape(R, L)
    n2 = negative.reshape(R, L)

    target_bytes, vmem_limit = _choose_block_budget(itemsize)
    TR = _choose_tile_rows(R, L, itemsize, target_bytes)
    grid = (pl.cdiv(R, TR),)

    margin_arr = jnp.full((1,), margin, dtype=jnp.float32)
    # (L, G) segment-indicator matrix: lane l belongs to packed sample l // D.
    seg_mat = (
        jnp.arange(L, dtype=jnp.int32)[:, None] // D
        == jnp.arange(G, dtype=jnp.int32)[None, :]
    ).astype(jnp.float32)

    smem_spec = pl.BlockSpec(memory_space=pltpu.MemorySpace.SMEM)
    seg_spec = pl.BlockSpec((L, G), lambda i: (0, 0))
    data_spec = pl.BlockSpec((TR, L), lambda i: (i, 0))
    out_spec = pl.BlockSpec((TR, G), lambda i: (i, 0))

    out = pl.pallas_call(
        _triplet_loss_kernel,
        out_shape=jax.ShapeDtypeStruct((R, G), jnp.float32),
        grid_spec=pltpu.PrefetchScalarGridSpec(
            num_scalar_prefetch=0,
            grid=grid,
            in_specs=[smem_spec, seg_spec, data_spec, data_spec, data_spec],
            out_specs=out_spec,
        ),
        compiler_params=pltpu.CompilerParams(
            dimension_semantics=("parallel",),
            vmem_limit_bytes=vmem_limit,
        ),
    )(margin_arr, seg_mat, a2, p2, n2)

    # (R, G) row-major -> sample index r*G + g, i.e. the original batch order.
    return out.reshape(Bm)


# ---------------------------------------------------------------------------
# Public wrapper (matches TripletLoss.forward)
# ---------------------------------------------------------------------------
def triplet_loss(anchor: jax.Array,
                 positive: jax.Array,
                 negative: jax.Array,
                 margin: float = 1.0) -> jax.Array:
    """Per-sample triplet losses, shape (B,), matching TripletLoss.forward."""
    assert anchor.shape == positive.shape == negative.shape
    assert anchor.ndim == 2
    B, D = anchor.shape

    # Lane-dense packing for small feature dims: G consecutive samples share
    # one 128-lane row.
    if D < 128 and 128 % D == 0:
        G = 128 // D
    else:
        G = 1

    B_main = (B // G) * G
    if B_main == 0:
        # Fewer rows than one packed group: just run the unpacked kernel.
        G = 1
        B_main = B

    if B_main == B:
        a_m, p_m, n_m = anchor, positive, negative
    else:
        a_m, p_m, n_m = anchor[:B_main], positive[:B_main], negative[:B_main]

    main = _triplet_loss_pallas(a_m, p_m, n_m, margin, G)
    if B_main == B:
        return main

    # < G leftover rows: plain XLA (cheaper than a lane-sparse kernel pass).
    a_t = anchor[B_main:].astype(jnp.float32)
    p_t = positive[B_main:].astype(jnp.float32)
    n_t = negative[B_main:].astype(jnp.float32)
    dp = jnp.sum((a_t - p_t) ** 2, axis=1)
    dn = jnp.sum((a_t - n_t) ** 2, axis=1)
    tail = jnp.maximum(dp - dn + margin, 0.0)
    return jnp.concatenate([main, tail], axis=0)


def _reference(anchor, positive, negative, margin):
    a = anchor.astype(jnp.float32)
    p = positive.astype(jnp.float32)
    n = negative.astype(jnp.float32)
    dp = jnp.sum((a - p) ** 2, axis=1)
    dn = jnp.sum((a - n) ** 2, axis=1)
    return jnp.maximum(dp - dn + margin, 0.0)


if __name__ == "__main__":
    key = jax.random.PRNGKey(0)
    k1, k2, k3, k4, k5, k6, k7, k8, k9 = jax.random.split(key, 9)

    # Case 1: classifier-sized shapes (batch=8, embedding dim=32).
    # Exercises the lane-packed path (G = 128 // 32 = 4).
    B, D = 8, 32
    anchor = jax.random.normal(k1, (B, D), dtype=jnp.float32)
    positive = jax.random.normal(k2, (B, D), dtype=jnp.float32)
    negative = jax.random.normal(k3, (B, D), dtype=jnp.float32)
    losses = jax.block_until_ready(triplet_loss(anchor, positive, negative, margin=1.0))
    ref = _reference(anchor, positive, negative, 1.0)
    assert losses.shape == (B,)
    assert jnp.allclose(losses, ref, rtol=1e-5, atol=1e-5)

    # Case 2: batch not divisible by the packing factor -> packed kernel on
    # the first floor(B/G)*G rows + XLA tail for the leftover rows.
    B2, D2 = 6, 32
    a2 = jax.random.normal(k4, (B2, D2), dtype=jnp.float32)
    p2 = jax.random.normal(k5, (B2, D2), dtype=jnp.float32)
    n2 = jax.random.normal(k6, (B2, D2), dtype=jnp.float32)
    losses2 = jax.block_until_ready(triplet_loss(a2, p2, n2, margin=0.5))
    ref2 = _reference(a2, p2, n2, 0.5)
    assert losses2.shape == (B2,)
    assert jnp.allclose(losses2, ref2, rtol=1e-5, atol=1e-5)

    # Case 3: modest batch with a partial tail block and a multi-step grid
    # (B=250, D=32 -> R=62 packed rows, TR=16, grid=(4,)), bf16 inputs to
    # exercise dtype-aware block sizing and in-kernel upcast.
    B3, D3 = 250, 32
    a3 = jax.random.normal(k7, (B3, D3), dtype=jnp.float32).astype(jnp.bfloat16)
    p3 = jax.random.normal(k8, (B3, D3), dtype=jnp.float32).astype(jnp.bfloat16)
    n3 = jax.random.normal(k9, (B3, D3), dtype=jnp.float32).astype(jnp.bfloat16)
    losses3 = jax.block_until_ready(triplet_loss(a3, p3, n3, margin=1.0))
    ref3 = _reference(a3, p3, n3, 1.0)
    assert losses3.shape == (B3,)
    assert jnp.allclose(losses3, ref3, rtol=1e-3, atol=1e-3)

    print("KERNEL_OK")
</pallas_src>

<mosaic_0001>
module attributes {stable_mosaic.version = 11 : i64} {
  func.func @_triplet_loss_kernel(%arg0: i32, %arg1: memref<1xf32, #tpu.memory_space<smem>>, %arg2: memref<128x4xf32, #tpu.memory_space<vmem>>, %arg3: memref<2x128xf32, #tpu.memory_space<vmem>>, %arg4: memref<2x128xf32, #tpu.memory_space<vmem>>, %arg5: memref<2x128xf32, #tpu.memory_space<vmem>>, %arg6: memref<2x4xf32, #tpu.memory_space<vmem>>) attributes {dimension_semantics = [#tpu.dimension_semantics<parallel>], iteration_bounds = array<i64: 1>, scalar_prefetch = 0 : i64, scratch_operands = 0 : i64, tpu.core_type = #tpu.core_type<tc>, window_params = [{transform_indices = @transform_0, window_bounds = array<i64: 1>}, {pipeline_mode = #tpu.pipeline_mode<synchronous>, transform_indices = @transform_1, window_bounds = array<i64: 128, 4>}, {transform_indices = @transform_2, window_bounds = array<i64: 2, 128>}, {transform_indices = @transform_3, window_bounds = array<i64: 2, 128>}, {transform_indices = @transform_4, window_bounds = array<i64: 2, 128>}, {transform_indices = @transform_5, window_bounds = array<i64: 2, 4>}]} {
    %c0 = arith.constant 0 : index
    %c0_0 = arith.constant 0 : index
    %0 = vector.load %arg3[%c0, %c0_0] : memref<2x128xf32, #tpu.memory_space<vmem>>, vector<2x128xf32>
    %c0_1 = arith.constant 0 : index
    %c0_2 = arith.constant 0 : index
    %1 = vector.load %arg4[%c0_1, %c0_2] : memref<2x128xf32, #tpu.memory_space<vmem>>, vector<2x128xf32>
    %c0_3 = arith.constant 0 : index
    %c0_4 = arith.constant 0 : index
    %2 = vector.load %arg5[%c0_3, %c0_4] : memref<2x128xf32, #tpu.memory_space<vmem>>, vector<2x128xf32>
    %3 = arith.subf %0, %1 : vector<2x128xf32>
    %4 = arith.subf %0, %2 : vector<2x128xf32>
    %5 = arith.mulf %3, %3 : vector<2x128xf32>
    %6 = arith.mulf %4, %4 : vector<2x128xf32>
    %7 = arith.subf %5, %6 : vector<2x128xf32>
    %c0_5 = arith.constant 0 : index
    %c0_6 = arith.constant 0 : index
    %8 = vector.load %arg2[%c0_5, %c0_6] : memref<128x4xf32, #tpu.memory_space<vmem>>, vector<128x4xf32>
    %cst = arith.constant dense<0.000000e+00> : vector<2x4xf32>
    %9 = tpu.matmul %7, %8, %cst {dimension_numbers = #tpu.dot_dimension_numbers<[1], [0], [0], [1], [0, 0, 1, 1], [], []>} : vector<2x128xf32>, vector<128x4xf32>, vector<2x4xf32> -> vector<2x4xf32>
    %c0_7 = arith.constant 0 : index
    %10 = memref.load %arg1[%c0_7] : memref<1xf32, #tpu.memory_space<smem>>
    %11 = vector.broadcast %10 : f32 to vector<2x4xf32>
    %12 = arith.addf %9, %11 : vector<2x4xf32>
    %cst_8 = arith.constant 0.000000e+00 : f32
    %13 = vector.broadcast %cst_8 : f32 to vector<2x4xf32>
    %14 = arith.maximumf %12, %13 : vector<2x4xf32>
    %c0_9 = arith.constant 0 : index
    %c0_10 = arith.constant 0 : index
    %15 = vector.load %arg6[%c0_9, %c0_10] : memref<2x4xf32, #tpu.memory_space<vmem>>, vector<2x4xf32>
    tpu.vector_store %arg6[%c0_9, %c0_10], %14 {strides = array<i32>} : memref<2x4xf32, #tpu.memory_space<vmem>>, vector<2x4xf32>,
    return
  }
  func.func @transform_0(%arg0: i32) -> i32 {
    %c0_i32 = arith.constant 0 : i32
    %c0_i32_0 = arith.constant 0 : i32
    return %c0_i32 : i32
  }
  func.func @transform_1(%arg0: i32) -> (i32, i32) {
    %c0_i32 = arith.constant 0 : i32
    %c0_i32_0 = arith.constant 0 : i32
    %c0_i32_1 = arith.constant 0 : i32
    return %c0_i32, %c0_i32_0 : i32, i32
  }
  func.func @transform_2(%arg0: i32) -> (i32, i32) {
    %c0_i32 = arith.constant 0 : i32
    %c0_i32_0 = arith.constant 0 : i32
    return %arg0, %c0_i32 : i32, i32
  }
  func.func @transform_3(%arg0: i32) -> (i32, i32) {
    %c0_i32 = arith.constant 0 : i32
    %c0_i32_0 = arith.constant 0 : i32
    return %arg0, %c0_i32 : i32, i32
  }
  func.func @transform_4(%arg0: i32) -> (i32, i32) {
    %c0_i32 = arith.constant 0 : i32
    %c0_i32_0 = arith.constant 0 : i32
    return %arg0, %c0_i32 : i32, i32
  }
  func.func @transform_5(%arg0: i32) -> (i32, i32) {
    %c0_i32 = arith.constant 0 : i32
    %c0_i32_0 = arith.constant 0 : i32
    return %arg0, %c0_i32 : i32, i32
  }
}

</mosaic_0001>

<bundles_post_ra>
// kernel: tpu_custom_call.1
= control target key start
LH: loop header
LB: loop body
LE: loop exit
PB: predicated region body
PF: predicated region fallthrough
CT: control target
= control target key end

     0   :  { %v239_v3 = vmov 0.0|0.0   ;;  %vm240_vm0 = vmmov 0   ;;  %v241_v6 = vmov 0.0   ;;  %s345_s0 = inlined_call_operand.<no memory space> [shape: f32[1], index: 0, kind: input, shape index: {}]   ;;  %s346_s1 = inlined_call_operand.vmem [shape: f32[128,4], index: 1, kind: input, shape index: {}]   ;;  %s347_s2 = inlined_call_operand.vmem [shape: f32[2,128], index: 2, kind: input, shape index: {}]   ;;  %s348_s3 = inlined_call_operand.vmem [shape: f32[2,128], index: 3, kind: input, shape index: {}]   ;;  %s349_s4 = inlined_call_operand.vmem [shape: f32[2,128], index: 4, kind: input, shape index: {}]   ;;  %s350_s5 = inlined_call_operand.hbm [shape: f32[2,4], index: 5, kind: output, shape index: {}]  }
   0x1   :  { %v30_v0 = vld [vmem:[%s346_s1] sm:$0xff]  ;;  %v31_v1 = vld [vmem:[%s346_s1 + $0x8] sm:$0xff]  ;;  %v32_v2 = vld [vmem:[%s346_s1 + $0x10] sm:$0xff]  ;;  %187 = vmatprep.subr.bf16.mxu0 %v239_v3  ;;  %184 = vmatprep.mubr.msk.f32.mxu0 %vm240_vm0, %v241_v6 }
   0x2   :  { %v188_v4 = vpack.c.bf16 %v31_v1, %v30_v0  ;;  %v33_v5 = vld [vmem:[%s346_s1 + $0x18] sm:$0xff]  ;;  %v34_v8 = vld [vmem:[%s346_s1 + $0x20] sm:$0xff]  ;;  %v35_v9 = vld [vmem:[%s346_s1 + $0x28] sm:$0xff] }
   0x3   :  { %v191_v7 = vpack.c.bf16 %v33_v5, %v32_v2 }
   0x4   :  { %189 = vmatpush3.bf16.msra.mxu0 %v188_v4 }
   0x5   :  { %190 = vmatprep.subr.bf16.mxu0 %v239_v3 }
   0x6   :  { %11 = vsyncpa [#allocation4], 0  ;;  %v194_v10 = vpack.c.bf16 %v35_v9, %v34_v8  ;;  %v36_v11 = vld [vmem:[%s346_s1 + $0x30] sm:$0xff]  ;;  %v37_v12 = vld [vmem:[%s346_s1 + $0x38] sm:$0xff]  ;;  %v47_v34 = vstv %s345_s0  ;;  %s242_s30 = smov [#allocation3]   ;;  %vm119_vm1 = vcmask 25600  }
   0x7   :  { %v197_v13 = vpack.c.bf16 %v37_v12, %v36_v11  ;;  %v38_v14 = vld [vmem:[%s346_s1 + $0x40] sm:$0xff]  ;;  %v39_v15 = vld [vmem:[%s346_s1 + $0x48] sm:$0xff]  ;;  %v40_v17 = vld [vmem:[%s346_s1 + $0x50] sm:$0xff]  ;;  %s127_s6 = sshll.u32 %s242_s30, 4  ;;  %s128_s6 = int_to_ptr.vmem [resolvable:$true] %s127_s6 }
   0x8   :  { %192 = vmatpush3.bf16.msra.mxu0 %v191_v7  ;;  %v200_v16 = vpack.c.bf16 %v39_v15, %v38_v14  ;;  %v41_v18 = vld [vmem:[%s346_s1 + $0x58] sm:$0xff]  ;;  %v22_v20 = vld [vmem:[%s347_s2] sm:$0x3]  ;;  %v43_v24 = vld [vmem:[%s346_s1 + $0x68] sm:$0xff]  ;;  %p220_p1 = scmp.lt.s32.totalorder %s128_s6, %s128_s6 }
   0x9   :  { %193 = vmatprep.subr.bf16.mxu0 %v239_v3  ;;  %v203_v19 = vpack.c.bf16 %v41_v18, %v40_v17  ;;  %v23_v21 = vld [vmem:[%s348_s3] sm:$0x3]  ;;  %v44_v28 = vld [vmem:[%s346_s1 + $0x70] sm:$0xff]  ;;  %v45_v29 = vld [vmem:[%s346_s1 + $0x78] sm:$0xff] }
   0xa   :  { %v24_v22 = vld [vmem:[%s349_s4] sm:$0x3]  ;;  %v25_v25 = vsub.f32 %v22_v20, %v23_v21  ;;  %v209_v32 = vpack.c.bf16 %v45_v29, %v44_v28 }
   0xb   :  { %v42_v23 = vld [vmem:[%s346_s1 + $0x60] sm:$0xff]  ;;  %v26_v26 = vsub.f32 %v22_v20, %v24_v22  ;;  %s215_s1 = scalar_lea.vmem %s128_s6, 32 }
   0xc   :  { %195 = vmatpush3.bf16.msra.mxu0 %v194_v10  ;;  %v206_v27 = vpack.c.bf16 %v43_v24, %v42_v23  ;;  %v27_v30 = vmul.f32 %v25_v25, %v25_v25  ;;  %p216_p0 = scmp.ne.s32.totalorder %s128_s6, %s215_s1  ;;  %p221_p2 = scmp.lt.s32.totalorder %s215_s1, %s215_s1 }
   0xd   :  { %196 = vmatprep.subr.bf16.mxu0 %v239_v3  ;;  %v28_v31 = vmul.f32 %v26_v26, %v26_v26 }
   0xe   :  { %p222_p3 = por %p221_p2, %p220_p1 }
   0xf   :  { %v29_v33 = vsub.f32 %v27_v30, %v28_v31 }
  0x10   :  { %198 = vmatpush3.bf16.msra.mxu0 %v197_v13  ;;  %p223_p4 = pnand %p222_p3, %p216_p0 }
  0x11   :  { %199 = vmatprep.subr.bf16.mxu0 %v239_v3 }
  0x14   :  { %201 = vmatpush3.bf16.msra.mxu0 %v200_v16 }
  0x15   :  { %202 = vmatprep.subr.bf16.mxu0 %v239_v3 }
  0x18   :  { %204 = vmatpush3.bf16.msra.mxu0 %v203_v19 }
  0x19   :  { %205 = vmatprep.subr.bf16.mxu0 %v239_v3 }
  0x1c   :  { %207 = vmatpush3.bf16.msra.mxu0 %v206_v27 }
  0x1d   :  { %208 = vmatprep.subr.bf16.mxu0 %v239_v3 }
  0x20   :  { %210 = vmatpush3.bf16.msra.mxu0 %v209_v32 }
  0x23   :  { %185 = vmatmul.mubr.f32.vlgmr.msra.gmra.mrb[0].mxu0 %v29_v33 }
  0xf6   :  { %v114_v35 = vpop.f32.mrb[0].mxu0 }
  0xf7   :  { %v115_v36 = vadd.f32 %v114_v35, %v47_v34  ;;  %v186_v37 = vpop.f32.mrb[1].mxu0 }
  0xf9   :  { %v118_v38 = vmax.f32 %v115_v36, 0.0 }
  0xfb   :  { %120 = vst.msk [vmem:[#allocation3] sm:$0x3] %vm119_vm1, %v118_v38 }
  0xfc   :  { %226 = shalt.err (!%p223_p4)
}
  0xfd   :  { %s227_s0 = scalar_lea.hbm %s350_s5, 32 }
  0xfe   :  { %p228_p5 = scmp.ne.s32.totalorder %s350_s5, %s227_s0  ;;  %p231_p6 = scmp.lt.u32.totalorder %s227_s0, %s350_s5 }
 0x100   :  { %p233_p7 = pnand %p231_p6, %p228_p5 }
 0x102   :  { %236 = shalt.err (!%p233_p7)
}
 0x103   :  { %130 = dma.vmem_to_hbm [thread:$0]  %s128_s6, 32, %s350_s5, [#allocation4]  }
 0x104   :  { %237 = dma.done.wait [#allocation4], 32  }
 0x105   :  { %238 = vsyncadd [#allocation4], 4294967264 }
 0x106   :  { %134 = vsyncpa [#allocation4], 1 }

</bundles_post_ra>
